<compile_context>
chip_gen: v6e
topology: v6e:2x2x1
jax: 0.10.0
libtpu: 0.0.40
codegen_flags: <defaults>
</compile_context>

<pallas_src>
import jax
import jax.numpy as jnp
from jax.experimental import pallas as pl
from jax.experimental.pallas import tpu as pltpu


def critic_kernel(s_ref, a_ref,
                  w1s_ref, w1a_ref, b1_ref,
                  w2_ref, b2_ref,
                  w3_ref, b3_ref,
                  w4_ref, b4_ref,
                  o_ref):
    """Whole MLP forward for one batch tile; all params resident in VMEM."""
    # Fused concat:  x @ W1 == state @ W1[:S] + action @ W1[S:]
    h1 = (jnp.dot(s_ref[...], w1s_ref[...], preferred_element_type=jnp.float32)
          + jnp.dot(a_ref[...], w1a_ref[...], preferred_element_type=jnp.float32)
          + b1_ref[...])
    h1 = jnp.maximum(h1, 0.0)

    h2 = jnp.dot(h1, w2_ref[...], preferred_element_type=jnp.float32) + b2_ref[...]
    h2 = jnp.maximum(h2, 0.0)

    h3 = jnp.dot(h2, w3_ref[...], preferred_element_type=jnp.float32) + b3_ref[...]
    h3 = jnp.maximum(h3, 0.0)

    # Final (out_features == 1) layer: VPU multiply + lane reduction instead of
    # an N=1 MXU pass; written lane-dense as a (1, batch_tile) row.
    q = jnp.sum(h3 * w4_ref[...], axis=-1)[None, :] + b4_ref[...]   # (1, bt)
    o_ref[0] = q.astype(o_ref.dtype)


def init_critic_params(key, state_dim, num_actions,
                       units_fc1=256, units_fc2=256, units_fc3=128):
    """PyTorch-Linear-style init (uniform +-1/sqrt(fan_in)).

    Weights stored as [in, out] (already transposed for `x @ W`)."""
    dims = [(state_dim + num_actions, units_fc1),
            (units_fc1, units_fc2),
            (units_fc2, units_fc3),
            (units_fc3, 1)]
    params = []
    for (fan_in, fan_out) in dims:
        key, kw, kb = jax.random.split(key, 3)
        bound = 1.0 / jnp.sqrt(jnp.float32(fan_in))
        w = jax.random.uniform(kw, (fan_in, fan_out), jnp.float32, -bound, bound)
        b = jax.random.uniform(kb, (1, fan_out), jnp.float32, -bound, bound)
        params.append((w, b))
    return params


def _round_up(x, m):
    return ((x + m - 1) // m) * m


def critic_forward(state, action, params, *, batch_tile=256):
    """Fused Critic MLP via a single Pallas kernel tiled over the batch."""
    state = state.astype(jnp.float32)
    action = action.astype(jnp.float32)
    B, S = state.shape
    A = action.shape[1]

    (w1, b1), (w2, b2), (w3, b3), (w4, b4) = params
    w1s, w1a = w1[:S], w1[S:]            # split first layer -> no wrapper concat
    w4_row = w4.reshape(1, -1)           # (1, 128) row for the VPU reduction

    # Clamp the batch tile for tiny batches; keep it a multiple of 8 (sublanes).
    bt = max(8, min(batch_tile, _round_up(B, 8)))
    bt = _round_up(bt, 8)
    B_pad = _round_up(B, bt)
    if B_pad != B:
        pad = B_pad - B                  # zero rows: independent per-row Q, discarded
        state = jnp.pad(state, ((0, pad), (0, 0)))
        action = jnp.pad(action, ((0, pad), (0, 0)))
    num_tiles = B_pad // bt              # >=2 tiles on big batches -> both v7x TCs

    def full_spec(arr):
        # Same (whole-array) block at every grid step: params stay VMEM-resident.
        return pl.BlockSpec(arr.shape, lambda i: (0,) * arr.ndim)

    d_in = S + A
    u1, u2, u3 = w1.shape[1], w2.shape[1], w3.shape[1]
    flops = int(2 * B_pad * (d_in * u1 + u1 * u2 + u2 * u3 + u3))
    bytes_accessed = int(4 * (B_pad * (d_in + 1)
                              + w1.size + b1.size + w2.size + b2.size
                              + w3.size + b3.size + w4.size + b4.size))

    out = pl.pallas_call(
        critic_kernel,
        out_shape=jax.ShapeDtypeStruct((num_tiles, 1, bt), jnp.float32),
        grid_spec=pltpu.PrefetchScalarGridSpec(
            num_scalar_prefetch=0,
            grid=(num_tiles,),
            in_specs=[
                pl.BlockSpec((bt, S), lambda i: (i, 0)),   # state tile
                pl.BlockSpec((bt, A), lambda i: (i, 0)),   # action tile
                full_spec(w1s), full_spec(w1a), full_spec(b1),
                full_spec(w2), full_spec(b2),
                full_spec(w3), full_spec(b3),
                full_spec(w4_row), full_spec(b4),
            ],
            # Lane-dense output: one (1, 1, bt) row per grid step (unmasked vst).
            out_specs=pl.BlockSpec((1, 1, bt), lambda i: (i, 0, 0)),
        ),
        compiler_params=pltpu.CompilerParams(
            dimension_semantics=("parallel",)),
        cost_estimate=pl.CostEstimate(
            flops=flops, transcendentals=0, bytes_accessed=bytes_accessed),
    )(state, action, w1s, w1a, b1, w2, b2, w3, b3, w4_row, b4)

    # (num_tiles, 1, bt) -> (B, 1); drop padded rows.
    return out.reshape(B_pad, 1)[:B]


def _reference(state, action, params):
    x = jnp.concatenate([state, action], axis=1)
    (w1, b1), (w2, b2), (w3, b3), (w4, b4) = params
    h = jnp.maximum(x @ w1 + b1, 0.0)
    h = jnp.maximum(h @ w2 + b2, 0.0)
    h = jnp.maximum(h @ w3 + b3, 0.0)
    return h @ w4 + b4


if __name__ == "__main__":
    # Small shapes consistent with the module's forward signature.
    batch = 20
    state_dim = 16
    num_actions = 4

    key = jax.random.PRNGKey(0)
    k_params, k_state, k_action = jax.random.split(key, 3)

    params = init_critic_params(k_params, state_dim, num_actions)
    state = jax.random.normal(k_state, (batch, state_dim), jnp.float32)
    action = jax.random.normal(k_action, (batch, num_actions), jnp.float32)

    q_ref = _reference(state, action, params)

    # Default config: tile clamps to the (padded) batch -> single grid step.
    q_a = jax.block_until_ready(critic_forward(state, action, params))
    # Small explicit tile: exercises multi-step grid + batch padding path.
    q_b = jax.block_until_ready(critic_forward(state, action, params, batch_tile=8))

    assert q_a.shape == (batch, 1) and q_b.shape == (batch, 1)
    assert jnp.allclose(q_a, q_ref, atol=1e-4, rtol=1e-4)
    assert jnp.allclose(q_b, q_ref, atol=1e-4, rtol=1e-4)

    print("KERNEL_OK")
</pallas_src>

<mosaic_0001>
module attributes {stable_mosaic.version = 11 : i64} {
  func.func @critic_kernel(%arg0: i32, %arg1: memref<24x16xf32, #tpu.memory_space<vmem>>, %arg2: memref<24x4xf32, #tpu.memory_space<vmem>>, %arg3: memref<16x256xf32, #tpu.memory_space<vmem>>, %arg4: memref<4x256xf32, #tpu.memory_space<vmem>>, %arg5: memref<1x256xf32, #tpu.memory_space<vmem>>, %arg6: memref<256x256xf32, #tpu.memory_space<vmem>>, %arg7: memref<1x256xf32, #tpu.memory_space<vmem>>, %arg8: memref<256x128xf32, #tpu.memory_space<vmem>>, %arg9: memref<1x128xf32, #tpu.memory_space<vmem>>, %arg10: memref<1x128xf32, #tpu.memory_space<vmem>>, %arg11: memref<1x1xf32, #tpu.memory_space<vmem>>, %arg12: memref<1x1x24xf32, #tpu.memory_space<vmem>>) attributes {dimension_semantics = [#tpu.dimension_semantics<parallel>], iteration_bounds = array<i64: 1>, scalar_prefetch = 0 : i64, scratch_operands = 0 : i64, tpu.core_type = #tpu.core_type<tc>, window_params = [{transform_indices = @transform_0, window_bounds = array<i64: 24, 16>}, {transform_indices = @transform_1, window_bounds = array<i64: 24, 4>}, {pipeline_mode = #tpu.pipeline_mode<synchronous>, transform_indices = @transform_2, window_bounds = array<i64: 16, 256>}, {pipeline_mode = #tpu.pipeline_mode<synchronous>, transform_indices = @transform_3, window_bounds = array<i64: 4, 256>}, {pipeline_mode = #tpu.pipeline_mode<synchronous>, transform_indices = @transform_4, window_bounds = array<i64: 1, 256>}, {pipeline_mode = #tpu.pipeline_mode<synchronous>, transform_indices = @transform_5, window_bounds = array<i64: 256, 256>}, {pipeline_mode = #tpu.pipeline_mode<synchronous>, transform_indices = @transform_6, window_bounds = array<i64: 1, 256>}, {pipeline_mode = #tpu.pipeline_mode<synchronous>, transform_indices = @transform_7, window_bounds = array<i64: 256, 128>}, {pipeline_mode = #tpu.pipeline_mode<synchronous>, transform_indices = @transform_8, window_bounds = array<i64: 1, 128>}, {pipeline_mode = #tpu.pipeline_mode<synchronous>, transform_indices = @transform_9, window_bounds = array<i64: 1, 128>}, {pipeline_mode = #tpu.pipeline_mode<synchronous>, transform_indices = @transform_10, window_bounds = array<i64: 1, 1>}, {transform_indices = @transform_11, window_bounds = array<i64: 1, 1, 24>}]} {
    %c0 = arith.constant 0 : index
    %c0_0 = arith.constant 0 : index
    %0 = vector.load %arg1[%c0, %c0_0] : memref<24x16xf32, #tpu.memory_space<vmem>>, vector<24x16xf32>
    %c0_1 = arith.constant 0 : index
    %c0_2 = arith.constant 0 : index
    %1 = vector.load %arg3[%c0_1, %c0_2] : memref<16x256xf32, #tpu.memory_space<vmem>>, vector<16x256xf32>
    %cst = arith.constant dense<0.000000e+00> : vector<24x256xf32>
    %2 = tpu.matmul %0, %1, %cst {dimension_numbers = #tpu.dot_dimension_numbers<[1], [0], [0], [1], [0, 0, 1, 1], [], []>} : vector<24x16xf32>, vector<16x256xf32>, vector<24x256xf32> -> vector<24x256xf32>
    %c0_3 = arith.constant 0 : index
    %c0_4 = arith.constant 0 : index
    %3 = vector.load %arg2[%c0_3, %c0_4] : memref<24x4xf32, #tpu.memory_space<vmem>>, vector<24x4xf32>
    %c0_5 = arith.constant 0 : index
    %c0_6 = arith.constant 0 : index
    %4 = vector.load %arg4[%c0_5, %c0_6] : memref<4x256xf32, #tpu.memory_space<vmem>>, vector<4x256xf32>
    %cst_7 = arith.constant dense<0.000000e+00> : vector<24x256xf32>
    %5 = tpu.matmul %3, %4, %cst_7 {dimension_numbers = #tpu.dot_dimension_numbers<[1], [0], [0], [1], [0, 0, 1, 1], [], []>} : vector<24x4xf32>, vector<4x256xf32>, vector<24x256xf32> -> vector<24x256xf32>
    %6 = arith.addf %2, %5 : vector<24x256xf32>
    %c0_8 = arith.constant 0 : index
    %c0_9 = arith.constant 0 : index
    %7 = vector.load %arg5[%c0_8, %c0_9] : memref<1x256xf32, #tpu.memory_space<vmem>>, vector<1x256xf32>
    %8 = vector.broadcast %7 : vector<1x256xf32> to vector<24x256xf32>
    %9 = arith.addf %6, %8 : vector<24x256xf32>
    %cst_10 = arith.constant 0.000000e+00 : f32
    %10 = vector.broadcast %cst_10 : f32 to vector<24x256xf32>
    %11 = arith.maximumf %9, %10 : vector<24x256xf32>
    %c0_11 = arith.constant 0 : index
    %c0_12 = arith.constant 0 : index
    %12 = vector.load %arg6[%c0_11, %c0_12] : memref<256x256xf32, #tpu.memory_space<vmem>>, vector<256x256xf32>
    %cst_13 = arith.constant dense<0.000000e+00> : vector<24x256xf32>
    %13 = tpu.matmul %11, %12, %cst_13 {dimension_numbers = #tpu.dot_dimension_numbers<[1], [0], [0], [1], [0, 0, 1, 1], [], []>} : vector<24x256xf32>, vector<256x256xf32>, vector<24x256xf32> -> vector<24x256xf32>
    %c0_14 = arith.constant 0 : index
    %c0_15 = arith.constant 0 : index
    %14 = vector.load %arg7[%c0_14, %c0_15] : memref<1x256xf32, #tpu.memory_space<vmem>>, vector<1x256xf32>
    %15 = vector.broadcast %14 : vector<1x256xf32> to vector<24x256xf32>
    %16 = arith.addf %13, %15 : vector<24x256xf32>
    %cst_16 = arith.constant 0.000000e+00 : f32
    %17 = vector.broadcast %cst_16 : f32 to vector<24x256xf32>
    %18 = arith.maximumf %16, %17 : vector<24x256xf32>
    %c0_17 = arith.constant 0 : index
    %c0_18 = arith.constant 0 : index
    %19 = vector.load %arg8[%c0_17, %c0_18] : memref<256x128xf32, #tpu.memory_space<vmem>>, vector<256x128xf32>
    %cst_19 = arith.constant dense<0.000000e+00> : vector<24x128xf32>
    %20 = tpu.matmul %18, %19, %cst_19 {dimension_numbers = #tpu.dot_dimension_numbers<[1], [0], [0], [1], [0, 0, 1, 1], [], []>} : vector<24x256xf32>, vector<256x128xf32>, vector<24x128xf32> -> vector<24x128xf32>
    %c0_20 = arith.constant 0 : index
    %c0_21 = arith.constant 0 : index
    %21 = vector.load %arg9[%c0_20, %c0_21] : memref<1x128xf32, #tpu.memory_space<vmem>>, vector<1x128xf32>
    %22 = vector.broadcast %21 : vector<1x128xf32> to vector<24x128xf32>
    %23 = arith.addf %20, %22 : vector<24x128xf32>
    %cst_22 = arith.constant 0.000000e+00 : f32
    %24 = vector.broadcast %cst_22 : f32 to vector<24x128xf32>
    %25 = arith.maximumf %23, %24 : vector<24x128xf32>
    %c0_23 = arith.constant 0 : index
    %c0_24 = arith.constant 0 : index
    %26 = vector.load %arg10[%c0_23, %c0_24] : memref<1x128xf32, #tpu.memory_space<vmem>>, vector<1x128xf32>
    %27 = vector.broadcast %26 : vector<1x128xf32> to vector<24x128xf32>
    %28 = arith.mulf %25, %27 : vector<24x128xf32>
    %cst_25 = arith.constant dense<0.000000e+00> : vector<24xf32>
    %29 = vector.multi_reduction <add>, %28, %cst_25 [1] : vector<24x128xf32> to vector<24xf32>
    %30 = vector.shape_cast %29 : vector<24xf32> to vector<1x24xf32>
    %c0_26 = arith.constant 0 : index
    %c0_27 = arith.constant 0 : index
    %31 = vector.load %arg11[%c0_26, %c0_27] : memref<1x1xf32, #tpu.memory_space<vmem>>, vector<1x1xf32>
    %32 = vector.broadcast %31 : vector<1x1xf32> to vector<1x24xf32>
    %33 = arith.addf %30, %32 : vector<1x24xf32>
    %c0_28 = arith.constant 0 : index
    %c0_29 = arith.constant 0 : index
    %c0_30 = arith.constant 0 : index
    %34 = vector.load %arg12[%c0_28, %c0_29, %c0_30] : memref<1x1x24xf32, #tpu.memory_space<vmem>>, vector<1x1x24xf32>
    %35 = vector.shape_cast %34 : vector<1x1x24xf32> to vector<1x24xf32>
    %36 = vector.shape_cast %33 : vector<1x24xf32> to vector<1x1x24xf32>
    tpu.vector_store %arg12[%c0_28, %c0_29, %c0_30], %36 {strides = array<i32>} : memref<1x1x24xf32, #tpu.memory_space<vmem>>, vector<1x1x24xf32>,
    return
  }
  func.func @transform_0(%arg0: i32) -> (i32, i32) {
    %c0_i32 = arith.constant 0 : i32
    %c0_i32_0 = arith.constant 0 : i32
    return %arg0, %c0_i32 : i32, i32
  }
  func.func @transform_1(%arg0: i32) -> (i32, i32) {
    %c0_i32 = arith.constant 0 : i32
    %c0_i32_0 = arith.constant 0 : i32
    return %arg0, %c0_i32 : i32, i32
  }
  func.func @transform_2(%arg0: i32) -> (i32, i32) {
    %c0_i32 = arith.constant 0 : i32
    %c0_i32_0 = arith.constant 0 : i32
    %c0_i32_1 = arith.constant 0 : i32
    return %c0_i32, %c0_i32_0 : i32, i32
  }
  func.func @transform_3(%arg0: i32) -> (i32, i32) {
    %c0_i32 = arith.constant 0 : i32
    %c0_i32_0 = arith.constant 0 : i32
    %c0_i32_1 = arith.constant 0 : i32
    return %c0_i32, %c0_i32_0 : i32, i32
  }
  func.func @transform_4(%arg0: i32) -> (i32, i32) {
    %c0_i32 = arith.constant 0 : i32
    %c0_i32_0 = arith.constant 0 : i32
    %c0_i32_1 = arith.constant 0 : i32
    return %c0_i32, %c0_i32_0 : i32, i32
  }
  func.func @transform_5(%arg0: i32) -> (i32, i32) {
    %c0_i32 = arith.constant 0 : i32
    %c0_i32_0 = arith.constant 0 : i32
    %c0_i32_1 = arith.constant 0 : i32
    return %c0_i32, %c0_i32_0 : i32, i32
  }
  func.func @transform_6(%arg0: i32) -> (i32, i32) {
    %c0_i32 = arith.constant 0 : i32
    %c0_i32_0 = arith.constant 0 : i32
    %c0_i32_1 = arith.constant 0 : i32
    return %c0_i32, %c0_i32_0 : i32, i32
  }
  func.func @transform_7(%arg0: i32) -> (i32, i32) {
    %c0_i32 = arith.constant 0 : i32
    %c0_i32_0 = arith.constant 0 : i32
    %c0_i32_1 = arith.constant 0 : i32
    return %c0_i32, %c0_i32_0 : i32, i32
  }
  func.func @transform_8(%arg0: i32) -> (i32, i32) {
    %c0_i32 = arith.constant 0 : i32
    %c0_i32_0 = arith.constant 0 : i32
    %c0_i32_1 = arith.constant 0 : i32
    return %c0_i32, %c0_i32_0 : i32, i32
  }
  func.func @transform_9(%arg0: i32) -> (i32, i32) {
    %c0_i32 = arith.constant 0 : i32
    %c0_i32_0 = arith.constant 0 : i32
    %c0_i32_1 = arith.constant 0 : i32
    return %c0_i32, %c0_i32_0 : i32, i32
  }
  func.func @transform_10(%arg0: i32) -> (i32, i32) {
    %c0_i32 = arith.constant 0 : i32
    %c0_i32_0 = arith.constant 0 : i32
    %c0_i32_1 = arith.constant 0 : i32
    return %c0_i32, %c0_i32_0 : i32, i32
  }
  func.func @transform_11(%arg0: i32) -> (i32, i32, i32) {
    %c0_i32 = arith.constant 0 : i32
    %c0_i32_0 = arith.constant 0 : i32
    %c0_i32_1 = arith.constant 0 : i32
    return %arg0, %c0_i32, %c0_i32_0 : i32, i32, i32
  }
}

</mosaic_0001>

<bundles_post_ra>
// kernel: tpu_custom_call.1
= control target key start
LH: loop header
LB: loop body
LE: loop exit
PB: predicated region body
PF: predicated region fallthrough
CT: control target
= control target key end

     0   :  { %s936_s0 = inlined_call_operand.vmem [shape: f32[24,16], index: 0, kind: input, shape index: {}]   ;;  %s937_s1 = inlined_call_operand.vmem [shape: f32[24,4], index: 1, kind: input, shape index: {}]   ;;  %s938_s2 = inlined_call_operand.vmem [shape: f32[16,256], index: 2, kind: input, shape index: {}]   ;;  %s939_s3 = inlined_call_operand.vmem [shape: f32[4,256], index: 3, kind: input, shape index: {}]   ;;  %s940_s4 = inlined_call_operand.vmem [shape: f32[1,256], index: 4, kind: input, shape index: {}]   ;;  %s941_s5 = inlined_call_operand.hbm [shape: f32[256,256], index: 5, kind: input, shape index: {}]   ;;  %s942_s6 = inlined_call_operand.vmem [shape: f32[1,256], index: 6, kind: input, shape index: {}]   ;;  %s943_s7 = inlined_call_operand.hbm [shape: f32[256,128], index: 7, kind: input, shape index: {}]   ;;  %s944_s8 = inlined_call_operand.vmem [shape: f32[1,128], index: 8, kind: input, shape index: {}]   ;;  %s945_s9 = inlined_call_operand.vmem [shape: f32[1,128], index: 9, kind: input, shape index: {}]   ;;  %s946_s10 = inlined_call_operand.<no memory space> [shape: f32[1,1], index: 10, kind: input, shape index: {}]   ;;  %s947_s11 = inlined_call_operand.hbm [shape: f32[1,1,24], index: 11, kind: output, shape index: {}]  }
   0x1   :  { %v16_v0 = vstv %s946_s10 }
   0x2   :  { %17 = vst [vmem:[#allocation2] sm:$0x1] %v16_v0 }
   0x3   :  { %18 = vsyncpa [#allocation4], 0 }
   0x4   :  { %19 = vsyncpa [#allocation7], 0 }
   0x5   :  { %20 = vsyncpa [#allocation5], 0  ;;  %s784_s19 = smov [#allocation3]  }
   0x6   :  { %s36_s20 = sshll.u32 %s784_s19, 4  ;;  %s37_s20 = int_to_ptr.vmem [resolvable:$true] %s36_s20 }
   0x7   :  { %s726_s21 = scalar_lea.vmem %s37_s20, 8192  ;;  %p731_p1 = scmp.lt.s32.totalorder %s37_s20, %s37_s20 }
   0x8   :  { %p727_p0 = scmp.ne.s32.totalorder %s37_s20, %s726_s21  ;;  %p732_p2 = scmp.lt.s32.totalorder %s726_s21, %s726_s21 }
   0xa   :  { %p733_p3 = por %p732_p2, %p731_p1 }
   0xc   :  { %p734_p4 = pnand %p733_p3, %p727_p0 }
   0xe   :  { %737 = shalt.err (!%p734_p4)
}
   0xf   :  { %s785_s22 = smov 256   ;;  %s786_s23 = smov 16  }
  0x10   :  { %42 = dma.hbm_to_vmem [thread:$0]  %s941_s5, 8192, %s37_s20, [#allocation4], %s785_s22, %s785_s22, %s786_s23  }
  0x11   :  { %s787_s10 = smov [#allocation6]  }
  0x12   :  { %s50_s26 = sshll.u32 %s787_s10, 4  ;;  %s51_s26 = int_to_ptr.vmem [resolvable:$true] %s50_s26 }
  0x13   :  { %s746_s27 = scalar_lea.vmem %s51_s26, 4096  ;;  %p751_p6 = scmp.lt.s32.totalorder %s51_s26, %s51_s26 }
  0x14   :  { %p747_p5 = scmp.ne.s32.totalorder %s51_s26, %s746_s27  ;;  %p752_p7 = scmp.lt.s32.totalorder %s746_s27, %s746_s27 }
  0x16   :  { %p753_p8 = por %p752_p7, %p751_p6 }
  0x18   :  { %p754_p9 = pnand %p753_p8, %p747_p5 }
  0x1a   :  { %757 = shalt.err (!%p754_p9)
}
  0x1b   :  { %s788_s28 = smov 128   ;;  %s789_s29 = smov 8  }
  0x1c   :  { %56 = dma.hbm_to_vmem [thread:$0]  %s943_s7, 4096, %s51_s26, [#allocation7], %s788_s28, %s788_s28, %s789_s29  }
  0x1d   :  { %778 = dma.done.wait [#allocation4], 8192  }
  0x1e   :  { %779 = vsyncadd [#allocation4], 4294959104 }
  0x1f   :  { %780 = dma.done.wait [#allocation7], 4096  }
  0x20   :  { %781 = vsyncadd [#allocation7], 4294963200  ;;  %v790_v1 = vmov 0.0   ;;  %v79_v2 = vld [vmem:[%s939_s3] sm:$0xff]  ;;  %vm92_vm0 = vcmask 1043456   ;;  %vm82_vm1 = vcmask 31744  }
  0x21   :  { %161 = vmatprep.mubr.f32.mxu1 %v790_v1  ;;  %v81_v3 = vcombine.high %v79_v2, %v79_v2  ;;  %v76_v4 = vld [vmem:[%s937_s1] sm:$0xff]  ;;  %v75_v5 = vld [vmem:[%s938_s2 + $0x18] sm:$0xff]  ;;  %v74_v6 = vld [vmem:[%s938_s2 + $0x10] sm:$0xff]  ;;  %vm180_vm2 = vcmask 130048   ;;  %vm627_vm3 = vcmask 130112   ;;  %vm634_vm4 = vcmask 195712  }
  0x22   :  { %v328_v7 = vld [vmem:[#allocation3 + $0xf8] sm:$0xff]  ;;  %v73_v8 = vld [vmem:[%s938_s2 + $0x8] sm:$0xff]  ;;  %v327_v9 = vld [vmem:[#allocation3 + $0xf0] sm:$0xff]  ;;  %vm637_vm5 = vcmask 188416  }
  0x23   :  { %655 = vmatprep.subr.msk.mxu1 %vm92_vm0, %v81_v3  ;;  %373 = vmatprep.subr.mxu0 %v328_v7  ;;  %v72_v10 = vld [vmem:[%s938_s2] sm:$0xff]  ;;  %v326_v11 = vld [vmem:[#allocation3 + $0xe8] sm:$0xff]  ;;  %v323_v15 = vld [vmem:[#allocation3 + $0xd0] sm:$0xff] }
  0x24   :  { %656 = vmatpush1.msk.msra.mxu1 %vm92_vm0, %v79_v2  ;;  %v77_v12 = vld [vmem:[%s937_s1 + $0x8] sm:$0xff]  ;;  %374 = vmatpush1.msra.mxu0 %v327_v9  ;;  %v324_v14 = vld [vmem:[#allocation3 + $0xd8] sm:$0xff]  ;;  %v78_v17 = vld [vmem:[%s937_s1 + $0x10] sm:$0xff] }
  0x25   :  { %657 = vmatmul.mubr.msk.f32.vlgmr.msra.gmra.mxu1 %vm82_vm1, %v76_v4  ;;  %218 = vmatprep.subr.mxu1 %v75_v5  ;;  %v325_v13 = vld [vmem:[#allocation3 + $0xe0] sm:$0xff]  ;;  %v322_v16 = vld [vmem:[#allocation3 + $0xc8] sm:$0xff]  ;;  %v320_v19 = vld [vmem:[#allocation3 + $0xb8] sm:$0xff] }
  0x26   :  { %219 = vmatpush1.msra.mxu1 %v74_v6  ;;  %167 = vmatprep.mubr.f32.mxu1 %v790_v1  ;;  %v321_v18 = vld [vmem:[#allocation3 + $0xc0] sm:$0xff]  ;;  %v319_v20 = vld [vmem:[#allocation3 + $0xb0] sm:$0xff]  ;;  %v318_v21 = vld [vmem:[#allocation3 + $0xa8] sm:$0xff] }
  0x27   :  { %220 = vmatprep.subr.mxu1 %v73_v8  ;;  %375 = vmatprep.subr.mxu0 %v326_v11  ;;  %v69_v22 = vld [vmem:[%s936_s0] sm:$0xff]  ;;  %v315_v25 = vld [vmem:[#allocation3 + $0x90] sm:$0xff]  ;;  %v314_v26 = vld [vmem:[#allocation3 + $0x88] sm:$0xff] }
  0x28   :  { %221 = vmatpush1.msra.mxu1 %v72_v10  ;;  %376 = vmatpush1.msra.mxu0 %v325_v13  ;;  %v317_v23 = vld [vmem:[#allocation3 + $0xa0] sm:$0xff]  ;;  %v316_v24 = vld [vmem:[#allocation3 + $0x98] sm:$0xff]  ;;  %v311_v30 = vld [vmem:[#allocation3 + $0x70] sm:$0xff] }
  0x29   :  { %658 = vmatmul.mubr.msk.f32.gmra.mxu1 %vm82_vm1, %v77_v12  ;;  %377 = vmatprep.subr.mxu0 %v324_v14  ;;  %v70_v27 = vld [vmem:[%s936_s0 + $0x8] sm:$0xff]  ;;  %v312_v29 = vld [vmem:[#allocation3 + $0x78] sm:$0xff]  ;;  %v71_v32 = vld [vmem:[%s936_s0 + $0x10] sm:$0xff] }
  0x2a   :  { %173 = vmatprep.mubr.f32.mxu1 %v790_v1  ;;  %378 = vmatpush1.msra.mxu0 %v323_v15  ;;  %v313_v28 = vld [vmem:[#allocation3 + $0x80] sm:$0xff]  ;;  %v310_v31 = vld [vmem:[#allocation3 + $0x68] sm:$0xff]  ;;  %v308_v34 = vld [vmem:[#allocation3 + $0x58] sm:$0xff] }
  0x2b   :  { %379 = vmatprep.subr.mxu0 %v322_v16  ;;  %v309_v33 = vld [vmem:[#allocation3 + $0x60] sm:$0xff]  ;;  %v307_v35 = vld [vmem:[#allocation3 + $0x50] sm:$0xff]  ;;  %v306_v36 = vld [vmem:[#allocation3 + $0x48] sm:$0xff] }
  0x2c   :  { %380 = vmatpush1.msra.mxu0 %v321_v18  ;;  %v305_v37 = vld [vmem:[#allocation3 + $0x40] sm:$0xff]  ;;  %v304_v38 = vld [vmem:[#allocation3 + $0x38] sm:$0xff]  ;;  %v303_v39 = vld [vmem:[#allocation3 + $0x30] sm:$0xff] }
  0x2d   :  { %659 = vmatmul.mubr.msk.f32.gmra.mxu1 %vm82_vm1, %v78_v17  ;;  %381 = vmatprep.subr.mxu0 %v320_v19  ;;  %v302_v40 = vld [vmem:[#allocation3 + $0x28] sm:$0xff]  ;;  %v301_v41 = vld [vmem:[#allocation3 + $0x20] sm:$0xff]  ;;  %v300_v42 = vld [vmem:[#allocation3 + $0x18] sm:$0xff] }
  0x2e   :  { %254 = vmatprep.mubr.f32.mxu1 %v790_v1  ;;  %382 = vmatpush1.msra.mxu0 %v319_v20  ;;  %v299_v43 = vld [vmem:[#allocation3 + $0x10] sm:$0xff]  ;;  %v298_v44 = vld [vmem:[#allocation3 + $0x8] sm:$0xff]  ;;  %v297_v45 = vld [vmem:[#allocation3] sm:$0xff] }
  0x2f   :  { %383 = vmatprep.subr.mxu0 %v318_v21  ;;  %v360_v46 = vld [vmem:[#allocation3 + $0x1f8] sm:$0xff]  ;;  %v359_v47 = vld [vmem:[#allocation3 + $0x1f0] sm:$0xff]  ;;  %v358_v48 = vld [vmem:[#allocation3 + $0x1e8] sm:$0xff] }
  0x30   :  { %384 = vmatpush1.msra.mxu0 %v317_v23  ;;  %v357_v49 = vld [vmem:[#allocation3 + $0x1e0] sm:$0xff]  ;;  %v356_v50 = vld [vmem:[#allocation3 + $0x1d8] sm:$0xff]  ;;  %v355_v51 = vld [vmem:[#allocation3 + $0x1d0] sm:$0xff] }
  0x31   :  { %660 = vmatmul.mubr.msk.f32.vlgmr.msra.gmra.mxu1 %vm180_vm2, %v69_v22  ;;  %385 = vmatprep.subr.mxu0 %v316_v24  ;;  %v354_v52 = vld [vmem:[#allocation3 + $0x1c8] sm:$0xff]  ;;  %v353_v53 = vld [vmem:[#allocation3 + $0x1c0] sm:$0xff]  ;;  %v352_v54 = vld [vmem:[#allocation3 + $0x1b8] sm:$0xff] }
  0x32   :  { %260 = vmatprep.mubr.f32.mxu1 %v790_v1  ;;  %386 = vmatpush1.msra.mxu0 %v315_v25  ;;  %v351_v55 = vld [vmem:[#allocation3 + $0x1b0] sm:$0xff]  ;;  %v350_v56 = vld [vmem:[#allocation3 + $0x1a8] sm:$0xff]  ;;  %v349_v57 = vld [vmem:[#allocation3 + $0x1a0] sm:$0xff] }
  0x33   :  { %387 = vmatprep.subr.mxu0 %v314_v26  ;;  %v348_v58 = vld [vmem:[#allocation3 + $0x198] sm:$0xff]  ;;  %v347_v59 = vld [vmem:[#allocation3 + $0x190] sm:$0xff]  ;;  %v346_v60 = vld [vmem:[#allocation3 + $0x188] sm:$0xff] }
  0x34   :  { %388 = vmatpush1.msra.mxu0 %v313_v28  ;;  %v345_v61 = vld [vmem:[#allocation3 + $0x180] sm:$0xff]  ;;  %v344_v62 = vld [vmem:[#allocation3 + $0x178] sm:$0xff]  ;;  %v343_v63 = vld [vmem:[#allocation3 + $0x170] sm:$0xff] }
  0x35   :  { %661 = vmatmul.mubr.msk.f32.gmra.mxu1 %vm180_vm2, %v70_v27  ;;  %389 = vmatprep.subr.mxu0 %v312_v29  ;;  %v342_v0 = vld [vmem:[#allocation3 + $0x168] sm:$0xff]  ;;  %v340_v2 = vld [vmem:[#allocation3 + $0x158] sm:$0xff]  ;;  %v339_v3 = vld [vmem:[#allocation3 + $0x150] sm:$0xff] }
  0x36   :  { %266 = vmatprep.mubr.f32.mxu1 %v790_v1  ;;  %390 = vmatpush1.msra.mxu0 %v311_v30  ;;  %v341_v1 = vld [vmem:[#allocation3 + $0x160] sm:$0xff]  ;;  %v338_v4 = vld [vmem:[#allocation3 + $0x148] sm:$0xff]  ;;  %v336_v6 = vld [vmem:[#allocation3 + $0x138] sm:$0xff] }
  0x37   :  { %391 = vmatprep.subr.mxu0 %v310_v31  ;;  %v337_v5 = vld [vmem:[#allocation3 + $0x140] sm:$0xff]  ;;  %v335_v7 = vld [vmem:[#allocation3 + $0x130] sm:$0xff]  ;;  %v334_v8 = vld [vmem:[#allocation3 + $0x128] sm:$0xff] }
  0x38   :  { %392 = vmatpush1.msra.mxu0 %v309_v33  ;;  %v333_v9 = vld [vmem:[#allocation3 + $0x120] sm:$0xff]  ;;  %v332_v10 = vld [vmem:[#allocation3 + $0x118] sm:$0xff]  ;;  %v331_v11 = vld [vmem:[#allocation3 + $0x110] sm:$0xff] }
  0x39   :  { %662 = vmatmul.mubr.msk.f32.gmra.mxu1 %vm180_vm2, %v71_v32  ;;  %393 = vmatprep.subr.mxu0 %v308_v34  ;;  %v330_v12 = vld [vmem:[#allocation3 + $0x108] sm:$0xff]  ;;  %v329_v13 = vld [vmem:[#allocation3 + $0x100] sm:$0xff]  ;;  %v493_v14 = vld [vmem:[#allocation6 + $0xf8] sm:$0xff] }
  0x3a   :  { %394 = vmatpush1.msra.mxu0 %v307_v35  ;;  %v477_v15 = vld [vmem:[#allocation6 + $0x78] sm:$0xff]  ;;  %v492_v16 = vld [vmem:[#allocation6 + $0xf0] sm:$0xff]  ;;  %665 = vmatprep.subr.mxu1 %v493_v14  ;;  %v491_v18 = vld [vmem:[#allocation6 + $0xe8] sm:$0xff] }
  0x3b   :  { %395 = vmatprep.subr.mxu0 %v306_v36  ;;  %v476_v17 = vld [vmem:[#allocation6 + $0x70] sm:$0xff]  ;;  %666 = vmatpush3.msra.mxu1 %v477_v15  ;;  %v475_v19 = vld [vmem:[#allocation6 + $0x68] sm:$0xff]  ;;  %v490_v20 = vld [vmem:[#allocation6 + $0xe0] sm:$0xff] }
  0x3c   :  { %396 = vmatpush1.msra.mxu0 %v305_v37  ;;  %667 = vmatprep.subr.mxu1 %v492_v16  ;;  %v474_v21 = vld [vmem:[#allocation6 + $0x60] sm:$0xff]  ;;  %v489_v22 = vld [vmem:[#allocation6 + $0xd8] sm:$0xff]  ;;  %v488_v24 = vld [vmem:[#allocation6 + $0xd0] sm:$0xff] }
  0x3d   :  { %397 = vmatprep.subr.mxu0 %v304_v38  ;;  %668 = vmatpush3.msra.mxu1 %v476_v17  ;;  %v473_v23 = vld [vmem:[#allocation6 + $0x58] sm:$0xff]  ;;  %v472_v25 = vld [vmem:[#allocation6 + $0x50] sm:$0xff]  ;;  %v487_v26 = vld [vmem:[#allocation6 + $0xc8] sm:$0xff] }
  0x3e   :  { %398 = vmatpush1.msra.mxu0 %v303_v39  ;;  %669 = vmatprep.subr.mxu1 %v491_v18  ;;  %v471_v27 = vld [vmem:[#allocation6 + $0x48] sm:$0xff]  ;;  %v486_v28 = vld [vmem:[#allocation6 + $0xc0] sm:$0xff]  ;;  %v485_v30 = vld [vmem:[#allocation6 + $0xb8] sm:$0xff]  ;;  %v275_v39 = vlaneseq }
  0x3f   :  { %399 = vmatprep.subr.mxu0 %v302_v40  ;;  %670 = vmatpush3.msra.mxu1 %v475_v19  ;;  %v470_v29 = vld [vmem:[#allocation6 + $0x40] sm:$0xff]  ;;  %v469_v31 = vld [vmem:[#allocation6 + $0x38] sm:$0xff]  ;;  %v484_v32 = vld [vmem:[#allocation6 + $0xb0] sm:$0xff] }
  0x40   :  { %400 = vmatpush1.msra.mxu0 %v301_v41  ;;  %671 = vmatprep.subr.mxu1 %v490_v20  ;;  %v468_v33 = vld [vmem:[#allocation6 + $0x30] sm:$0xff]  ;;  %v483_v34 = vld [vmem:[#allocation6 + $0xa8] sm:$0xff]  ;;  %v482_v36 = vld [vmem:[#allocation6 + $0xa0] sm:$0xff] }
  0x41   :  { %401 = vmatprep.subr.mxu0 %v300_v42  ;;  %672 = vmatpush3.msra.mxu1 %v474_v21  ;;  %v467_v35 = vld [vmem:[#allocation6 + $0x28] sm:$0xff]  ;;  %v466_v37 = vld [vmem:[#allocation6 + $0x20] sm:$0xff]  ;;  %v908_v42 = vshrl.u32 %v275_v39, 7  ;;  %v464_v14 = vld [vmem:[#allocation6 + $0x10] sm:$0xff] }
  0x42   :  { %402 = vmatpush1.msra.mxu0 %v299_v43  ;;  %673 = vmatprep.subr.mxu1 %v489_v22  ;;  %v479_v15 = vld [vmem:[#allocation6 + $0x88] sm:$0xff]  ;;  %v478_v17 = vld [vmem:[#allocation6 + $0x80] sm:$0xff] }
  0x43   :  { %403 = vmatprep.subr.mxu0 %v298_v44  ;;  %674 = vmatpush3.msra.mxu1 %v473_v23  ;;  %v463_v16 = vld [vmem:[#allocation6 + $0x8] sm:$0xff]  ;;  %v462_v18 = vld [vmem:[#allocation6] sm:$0xff] }
  0x44   :  { %404 = vmatpush1.msra.mxu0 %v297_v45  ;;  %675 = vmatprep.subr.mxu1 %v488_v24  ;;  %v911_v45 = vsub.s32 0, %v908_v42  ;;  %v361_v19 = vld [vmem:[%s942_s6] sm:$0x3] }
  0x45   :  { %405 = vmatprep.subr.mxu0 %v360_v46  ;;  %676 = vmatpush3.msra.mxu1 %v472_v25  ;;  %v273_v46 = vld [vmem:[%s940_s4] sm:$0x3] }
  0x46   :  { %406 = vmatpush2.msra.mxu0 %v359_v47  ;;  %677 = vmatprep.subr.mxu1 %v487_v26  ;;  %v281_v47 = vsub.s32 1, %v908_v42  ;;  %v366_v20 = vrot.slane %v361_v19, %v911_v45 }
  0x47   :  { %407 = vmatprep.subr.mxu0 %v358_v48  ;;  %678 = vmatpush3.msra.mxu1 %v471_v27 }
  0x48   :  { %408 = vmatpush2.msra.mxu0 %v357_v49  ;;  %679 = vmatprep.subr.mxu1 %v486_v28  ;;  %v370_v21 = vrot.slane %v361_v19, %v281_v47 }
  0x49   :  { %409 = vmatprep.subr.mxu0 %v356_v50  ;;  %680 = vmatpush3.msra.mxu1 %v470_v29  ;;  %v278_v50 = vrot.slane %v273_v46, %v911_v45 }
  0x4a   :  { %410 = vmatpush2.msra.mxu0 %v355_v51  ;;  %681 = vmatprep.subr.mxu1 %v485_v30 }
  0x4b   :  { %411 = vmatprep.subr.mxu0 %v354_v52  ;;  %682 = vmatpush3.msra.mxu1 %v469_v31  ;;  %v282_v52 = vrot.slane %v273_v46, %v281_v47  ;;  %v663_v46 = vld [vmem:[%s944_s8] ss:$0 sm:$0xff]  ;;  %s792_s8 = smov [#allocation8]  }
  0x4c   :  { %412 = vmatpush2.msra.mxu0 %v353_v53  ;;  %683 = vmatprep.subr.mxu1 %v484_v32 }
  0x4d   :  { %413 = vmatprep.subr.mxu0 %v352_v54  ;;  %684 = vmatpush3.msra.mxu1 %v468_v33 }
  0x4e   :  { %414 = vmatpush2.msra.mxu0 %v351_v55  ;;  %685 = vmatprep.subr.mxu1 %v483_v34 }
  0x4f   :  { %415 = vmatprep.subr.mxu0 %v350_v56  ;;  %686 = vmatpush3.msra.mxu1 %v467_v35 }
  0x50   :  { %416 = vmatpush2.msra.mxu0 %v349_v57  ;;  %687 = vmatprep.subr.mxu1 %v482_v36 }
  0x51   :  { %417 = vmatprep.subr.mxu0 %v348_v58  ;;  %688 = vmatpush3.msra.mxu1 %v466_v37 }
  0x52   :  { %418 = vmatpush2.msra.mxu0 %v347_v59 }
  0x53   :  { %419 = vmatprep.subr.mxu0 %v346_v60 }
  0x54   :  { %420 = vmatpush2.msra.mxu0 %v345_v61 }
  0x55   :  { %421 = vmatprep.subr.mxu0 %v344_v62 }
  0x56   :  { %422 = vmatpush2.msra.mxu0 %v343_v63 }
  0x57   :  { %423 = vmatprep.subr.mxu0 %v342_v0 }
  0x58   :  { %424 = vmatpush2.msra.mxu0 %v341_v1 }
  0x59   :  { %425 = vmatprep.subr.mxu0 %v340_v2 }
  0x5a   :  { %426 = vmatpush2.msra.mxu0 %v339_v3 }
  0x5b   :  { %427 = vmatprep.subr.mxu0 %v338_v4 }
  0x5c   :  { %428 = vmatpush2.msra.mxu0 %v337_v5 }
  0x5d   :  { %429 = vmatprep.subr.mxu0 %v336_v6 }
  0x5e   :  { %430 = vmatpush2.msra.mxu0 %v335_v7 }
  0x5f   :  { %431 = vmatprep.subr.mxu0 %v334_v8 }
  0x60   :  { %432 = vmatpush2.msra.mxu0 %v333_v9 }
  0x61   :  { %433 = vmatprep.subr.mxu0 %v332_v10 }
  0x62   :  { %434 = vmatpush2.msra.mxu0 %v331_v11  ;;  %v481_v11 = vld [vmem:[#allocation6 + $0x98] sm:$0xff] }
  0x63   :  { %435 = vmatprep.subr.mxu0 %v330_v12  ;;  %689 = vmatprep.subr.mxu1 %v481_v11  ;;  %v465_v12 = vld [vmem:[#allocation6 + $0x18] sm:$0xff] }
  0x64   :  { %436 = vmatpush2.msra.mxu0 %v329_v13  ;;  %690 = vmatpush3.msra.mxu1 %v465_v12  ;;  %v480_v13 = vld [vmem:[#allocation6 + $0x90] sm:$0xff] }
  0x65   :  { %691 = vmatprep.subr.mxu1 %v480_v13 }
  0x66   :  { %692 = vmatpush3.msra.mxu1 %v464_v14 }
  0x67   :  { %693 = vmatprep.subr.mxu1 %v479_v15 }
  0x68   :  { %694 = vmatpush3.msra.mxu1 %v463_v16 }
  0x69   :  { %695 = vmatprep.subr.mxu1 %v478_v17 }
  0x6a   :  { %696 = vmatpush3.msra.mxu1 %v462_v18 }
  0xe5   :  { %v163_v38 = vpop.f32.mrf.mxu1 }
  0xe7   :  { %v165_v40 = vpop.f32.mrf.mxu1 }
  0xe9   :  { %v169_v41 = vpop.f32.mrf.mxu1 }
  0xeb   :  { %v171_v43 = vpop.f32.mrf.mxu1 }
  0xed   :  { %v175_v44 = vpop.f32.mrf.mxu1 }
  0xef   :  { %v177_v48 = vpop.f32.mrf.mxu1 }
  0xf1   :  { %v256_v49 = vpop.f32.mrf.mxu1 }
  0xf2   :  { %v257_v51 = vadd.f32 %v256_v49, %v163_v38 }
  0xf3   :  { %v258_v53 = vpop.f32.mrf.mxu1 }
  0xf4   :  { %v259_v54 = vadd.f32 %v258_v53, %v165_v40  ;;  %v285_v55 = vadd.f32 %v278_v50, %v257_v51  ;;  %v664_v51 = vld [vmem:[%s945_s9] ss:$0 sm:$0xff]  ;;  %s645_s9 = sshll.u32 %s792_s8, 4  ;;  %s646_s9 = int_to_ptr.vmem [resolvable:$true] %s645_s9 }
  0xf5   :  { %v262_v56 = vpop.f32.mrf.mxu1  ;;  %s758_s14 = scalar_lea.vmem %s646_s9, 16  ;;  %s762_s15 = scalar_lea.vmem %s646_s9, 32 }
  0xf6   :  { %v263_v57 = vadd.f32 %v262_v56, %v169_v41  ;;  %v286_v58 = vadd.f32 %v282_v52, %v259_v54  ;;  %v291_v62 = vmax.f32 %v285_v55, 0.0  ;;  %v791_v41 = vmov 0   ;;  %p759_p10 = scmp.ne.s32.totalorder %s646_s9, %s758_s14  ;;  %p763_p11 = scmp.lt.s32.totalorder %s646_s9, %s646_s9 }
  0xf7   :  { %v264_v59 = vpop.f32.mrf.mxu1  ;;  %715 = vset.pattern.permute.xlu1 %v791_v41  ;;  %716 = vset.pattern.permute.xlu0 %v791_v41  ;;  %p764_p12 = scmp.lt.s32.totalorder %s762_s15, %s758_s14 }
  0xf8   :  { %v265_v60 = vadd.f32 %v264_v59, %v171_v43  ;;  %v292_v61 = vmax.f32 %v286_v58, 0.0  ;;  %v287_v63 = vadd.f32 %v278_v50, %v263_v57 }
  0xf9   :  { %v268_v0 = vpop.f32.mrf.mxu1  ;;  %p765_p13 = por %p764_p12, %p763_p11 }
  0xfa   :  { %v288_v1 = vadd.f32 %v282_v52, %v265_v60  ;;  %v269_v2 = vadd.f32 %v268_v0, %v175_v44  ;;  %437 = vmatprep.mubr.f32.mxu0 %v292_v61  ;;  %v293_v6 = vmax.f32 %v287_v63, 0.0  ;;  %v600_v0 = vld [vmem:[#allocation2] sm:$0x1] }
  0xfb   :  { %v270_v3 = vpop.f32.mrf.mxu1  ;;  %438 = vmatmul.mubr.f32.vlgmr.msra.gmra.mxu0 %v291_v62  ;;  %p766_p0 = pnand %p765_p13, %p759_p10 }
  0xfc   :  { %v294_v4 = vmax.f32 %v288_v1, 0.0  ;;  %v271_v5 = vadd.f32 %v270_v3, %v177_v48  ;;  %v289_v7 = vadd.f32 %v278_v50, %v269_v2  ;;  %v617_v1 = vand.u32 127, %v275_v39 }
  0xfe   :  { %v290_v8 = vadd.f32 %v282_v52, %v271_v5  ;;  %443 = vmatprep.mubr.f32.mxu0 %v294_v4  ;;  %v295_v10 = vmax.f32 %v289_v7, 0.0  ;;  %v622_v4 = vadd.s32 4294967288, %v617_v1  ;;  %v629_v5 = vadd.s32 4294967280, %v617_v1 }
  0xff   :  { %444 = vmatmul.mubr.f32.gmra.mxu0 %v293_v6  ;;  %v620_v7 = vsub.s32 %v617_v1, %v908_v42 }
 0x100   :  { %v296_v9 = vmax.f32 %v290_v8, 0.0  ;;  %v625_v8 = vsub.s32 %v622_v4, %v908_v42 }
 0x102   :  { %449 = vmatprep.mubr.f32.mxu0 %v296_v9  ;;  %v632_v9 = vsub.s32 %v629_v5, %v908_v42 }
 0x103   :  { %450 = vmatmul.mubr.f32.gmra.mxu0 %v295_v10 }
 0x1bb   :  { %v439_v22 = vpop.f32.mrf.mxu0 }
 0x1bc   :  { %v440_v23 = vadd.f32 %v439_v22, %v366_v20 }
 0x1bd   :  { %v441_v24 = vpop.f32.mrf.mxu0 }
 0x1be   :  { %v442_v25 = vadd.f32 %v441_v24, %v370_v21  ;;  %v456_v28 = vmax.f32 %v440_v23, 0.0 }
 0x1bf   :  { %v445_v26 = vpop.f32.mrf.mxu0 }
 0x1c0   :  { %v457_v27 = vmax.f32 %v442_v25, 0.0  ;;  %v446_v29 = vadd.f32 %v445_v26, %v366_v20 }
 0x1c1   :  { %v447_v30 = vpop.f32.mrf.mxu0 }
 0x1c2   :  { %v448_v31 = vadd.f32 %v447_v30, %v370_v21  ;;  %565 = vmatprep.mubr.f32.mxu1 %v457_v27  ;;  %v458_v34 = vmax.f32 %v446_v29, 0.0 }
 0x1c3   :  { %v451_v32 = vpop.f32.mrf.mxu0  ;;  %566 = vmatmul.mubr.f32.vlgmr.msra.gmra.mxu1 %v456_v28 }
 0x1c4   :  { %v459_v33 = vmax.f32 %v448_v31, 0.0  ;;  %v452_v35 = vadd.f32 %v451_v32, %v366_v20 }
 0x1c5   :  { %v453_v36 = vpop.f32.mrf.mxu0 }
 0x1c6   :  { %v454_v37 = vadd.f32 %v453_v36, %v370_v21  ;;  %570 = vmatprep.mubr.f32.mxu1 %v459_v33  ;;  %v460_v40 = vmax.f32 %v452_v35, 0.0 }
 0x1c7   :  { %571 = vmatmul.mubr.f32.gmra.mxu1 %v458_v34 }
 0x1c8   :  { %v461_v38 = vmax.f32 %v454_v37, 0.0 }
 0x1ca   :  { %575 = vmatprep.mubr.f32.mxu1 %v461_v38 }
 0x1cb   :  { %576 = vmatmul.mubr.f32.gmra.mxu1 %v460_v40 }
 0x283   :  { %v697_v43 = vpop.f32.mrf.mxu1 }
 0x285   :  { %v698_v44 = vpop.f32.mrf.mxu1 }
 0x286   :  { %v699_v47 = vadd.f32 %v698_v44, %v697_v43 }
 0x287   :  { %v700_v48 = vpop.f32.mrf.mxu1 }
 0x288   :  { %v568_v49 = vadd.f32 %v699_v47, %v663_v46 }
 0x289   :  { %v701_v50 = vpop.f32.mrf.mxu1 }
 0x28a   :  { %v702_v52 = vadd.f32 %v701_v50, %v700_v48  ;;  %v581_v53 = vmax.f32 %v568_v49, 0.0 }
 0x28b   :  { %v703_v54 = vpop.f32.mrf.mxu1 }
 0x28c   :  { %v573_v55 = vadd.f32 %v702_v52, %v663_v46  ;;  %v591_v56 = vmul.f32 %v664_v51, %v581_v53 }
 0x28d   :  { %v704_v57 = vpop.f32.mrf.mxu1 }
 0x28e   :  { %v582_v58 = vmax.f32 %v573_v55, 0.0  ;;  %v705_v59 = vadd.f32 %v704_v57, %v703_v54  ;;  %594 = vadd.xlane.f32.xlu0 %v591_v56 }
 0x290   :  { %v592_v60 = vmul.f32 %v664_v51, %v582_v58  ;;  %v578_v61 = vadd.f32 %v705_v59, %v663_v46 }
 0x292   :  { %596 = vadd.xlane.f32.xlu0 %v592_v60  ;;  %v583_v62 = vmax.f32 %v578_v61, 0.0 }
 0x294   :  { %v593_v63 = vmul.f32 %v664_v51, %v583_v62 }
 0x296   :  { %598 = vadd.xlane.f32.xlu1 %v593_v63 }
 0x2a7   :  { %603 = vperm.xlu1 %715, %v600_v0  }
 0x317   :  { %v595_v2 = vpop.xlane.xlu0 %594 }
 0x31b   :  { %v597_v11 = vpop.xlane.xlu0 %596 }
 0x31f   :  { %v599_v3 = vpop.xlane.xlu1 %598 }
 0x323   :  { %v604_v6 = vpop.permute.xlu1 %603 }
 0x324   :  { %v609_v10 = vrot.slane %v604_v6, %v911_v45 }
 0x326   :  { %v610_v12 = vadd.f32 %v609_v10, %v595_v2  ;;  %v611_v13 = vadd.f32 %v609_v10, %v597_v11  ;;  %v612_v14 = vadd.f32 %v609_v10, %v599_v3 }
 0x328   :  { %v621_v39 = vrot.slane %v610_v12, %v620_v7  ;;  %v626_v15 = vrot.slane %v611_v13, %v625_v8  ;;  %v633_v16 = vrot.slane %v612_v14, %v632_v9 }
 0x32a   :  { %v628_v17 = vsel %vm627_vm3, %v626_v15, %v621_v39 }
 0x32b   :  { %v635_v18 = vsel %vm634_vm4, %v633_v16, %v628_v17 }
 0x32c   :  { %638 = vst.msk [vmem:[#allocation8] sm:$0x1] %vm637_vm5, %v635_v18 }
 0x32d   :  { %769 = shalt.err (!%p766_p0)
}
 0x32e   :  { %648 = dma.vmem_to_hbm [thread:$0]  %s646_s9, 16, %s947_s11, [#allocation5]  }
 0x32f   :  { %782 = dma.done.wait [#allocation5], 16  }
 0x330   :  { %783 = vsyncadd [#allocation5], 4294967280 }
 0x331   :  { %652 = vsyncpa [#allocation4], 1 }
 0x332   :  { %653 = vsyncpa [#allocation7], 1 }
 0x333   :  { %654 = vsyncpa [#allocation5], 1 }

</bundles_post_ra>
